<compile_context>
chip_gen: v7x
topology: tpu7x:2x2x1
jax: 0.10.0
libtpu: 0.0.40
codegen_flags: <defaults>
</compile_context>

<pallas_src>
import functools

import jax
import jax.numpy as jnp
from jax.experimental import pallas as pl
from jax.experimental.pallas import tpu as pltpu

EPS = 1e-6
LANES = 128
SUBLANES = 8


def _is_two_core_chip() -> bool:
    """Best-effort detection of a 2-TensorCore chip (v7x). Falls back to False."""
    try:
        kind = (getattr(jax.devices()[0], "device_kind", "") or "").lower().replace(" ", "")
        return ("v7" in kind) or ("tpu7" in kind)
    except Exception:
        return False


def _poisson_mle_kernel(x_ref, y_ref, o_ref, *, rows, tm, steps, num_blocks, has_tail):
    s = pl.program_id(1)    # sequential reduction ("arbitrary") axis

    # Zero this partial's accumulator block on its first step.
    @pl.when(s == 0)
    def _():
        o_ref[...] = jnp.zeros_like(o_ref)

    x = jnp.maximum(x_ref[...].astype(jnp.float32), EPS)
    y = jnp.maximum(y_ref[...].astype(jnp.float32), EPS)
    arg = x - y - y * jnp.log(x / y)

    def fold_and_accumulate(a):
        # Fold (tm, 128) -> (8, 128): one VPU add per input vreg.  The reshape
        # keeps the trailing (8, 128) vreg tile intact (no retile / XLU).
        n_vregs = tm // SUBLANES
        a3 = a.reshape(n_vregs, SUBLANES, LANES)
        if n_vregs % 4 == 0 and n_vregs >= 8:
            # 4 interleaved accumulators -> breaks the serial add-dependency
            # chain so the VALU slots stay fed when near VPU-bound.
            partial = a3.reshape(4, n_vregs // 4, SUBLANES, LANES).sum(axis=1).sum(axis=0)
        else:
            partial = a3.sum(axis=0)
        o_ref[...] += partial[None, :, :]

    if not has_tail:
        # Row count divides the tiling exactly: no mask, no branch at all.
        fold_and_accumulate(arg)
    else:
        pi = pl.program_id(0)
        # int32 row index only overflows beyond ~2.7e11 elements -- not a
        # practical concern for this loss.
        logical_block = pi * steps + s
        is_edge = logical_block >= num_blocks - 1

        # Interior blocks: fast path, no iota/compare/select cost at runtime.
        @pl.when(jnp.logical_not(is_edge))
        def _():
            fold_and_accumulate(arg)

        # Tail block (and fully-masked overhang blocks whose index_map was
        # clamped onto the last valid block): mask rows beyond `rows`.
        # jnp.where is a select, so NaN/inf from OOB garbage never propagates.
        @pl.when(is_edge)
        def _():
            row = (jax.lax.broadcasted_iota(jnp.int32, (tm, 1), 0)
                   + logical_block * tm)
            fold_and_accumulate(jnp.where(row < rows, arg, 0.0))


def poisson_mle(inputs: jax.Array, targets: jax.Array, *, block_bytes: int | None = None,
                cores: int | None = None) -> jax.Array:
    """Pallas equivalent of PoissonMLE.forward. Returns a scalar (f32)."""
    assert inputs.shape == targets.shape

    # Keep the native dtype (bf16/fp16 stream at half the bytes); upcast in-kernel.
    x = inputs.reshape(-1)
    y = targets.reshape(-1)
    n = x.shape[0]
    itemsize = jnp.dtype(inputs.dtype).itemsize

    # Lane-align only if strictly required (<=127 zero elements; zeros are
    # exactly neutral for this loss: eps - eps - eps*log(1) = 0).
    if n % LANES:
        pad = LANES - (n % LANES)
        x = jnp.pad(x, (0, pad))
        y = jnp.pad(y, (0, pad))
    rows = x.shape[0] // LANES
    x2 = x.reshape(rows, LANES)
    y2 = y.reshape(rows, LANES)

    two_core = _is_two_core_chip()
    if cores is None:
        # Only split the reduction on 2-TensorCore chips; on single-TC chips
        # p=2 just serializes and can waste a clamped re-read of the last tile.
        cores = 2 if two_core else 1
    if block_bytes is None:
        # >= ~2 MiB per input block keeps the ~0.35 us/step overhead amortized;
        # 4 MiB on v7x where 3.2 TB/s HBM makes per-step overhead proportionally
        # larger.  Double-buffered x+y: 8 MiB (16 MiB v7x) -> fits scoped VMEM.
        block_bytes = (4 << 20) if two_core else (2 << 20)

    # Row tile: sized by bytes, rounded to the packed sublane count for this
    # dtype, clamped so tiny inputs don't allocate huge VMEM blocks.
    row_align = {4: SUBLANES, 2: 2 * SUBLANES, 1: 4 * SUBLANES}.get(itemsize, SUBLANES)
    tm_req = max(row_align, block_bytes // (LANES * itemsize))
    rows_rounded = pl.cdiv(rows, row_align) * row_align
    tm_eff = max(row_align, min((tm_req // row_align) * row_align, rows_rounded))

    num_blocks = pl.cdiv(rows, tm_eff)
    p = cores if num_blocks >= cores else 1
    steps = pl.cdiv(num_blocks, p)
    # Masking is only needed if there is a partial tail block or overhanging
    # (clamped) grid steps; otherwise the kernel contains no mask code at all.
    has_tail = (rows % tm_eff != 0) or (p * steps != num_blocks)

    def in_index(pi, s):
        # Clamp overhanging steps onto the last valid block; the kernel's edge
        # path zeroes their contribution.
        return (jnp.minimum(pi * steps + s, num_blocks - 1), 0)

    kernel = functools.partial(_poisson_mle_kernel, rows=rows, tm=tm_eff,
                               steps=steps, num_blocks=num_blocks, has_tail=has_tail)

    cost = pl.CostEstimate(
        flops=6 * n,
        transcendentals=2 * n,
        bytes_accessed=2 * n * itemsize,
    )

    partials = pl.pallas_call(
        kernel,
        out_shape=jax.ShapeDtypeStruct((p, SUBLANES, LANES), jnp.float32),
        grid_spec=pltpu.PrefetchScalarGridSpec(
            num_scalar_prefetch=0,
            grid=(p, steps),
            in_specs=[
                pl.BlockSpec((tm_eff, LANES), in_index),
                pl.BlockSpec((tm_eff, LANES), in_index),
            ],
            out_specs=pl.BlockSpec((1, SUBLANES, LANES), lambda pi, s: (pi, 0, 0)),
        ),
        compiler_params=pltpu.CompilerParams(
            dimension_semantics=("parallel", "arbitrary"),
        ),
        cost_estimate=cost,
    )(x2, y2)

    # Tiny epilogue reduce (p * 8 * 128 floats) in plain XLA.
    return jnp.sum(partials)


def poisson_mle_ref(inputs, targets):
    x = jnp.maximum(inputs.astype(jnp.float32), EPS)
    y = jnp.maximum(targets.astype(jnp.float32), EPS)
    return jnp.sum(x - y - y * jnp.log(x / y))


if __name__ == "__main__":
    key = jax.random.PRNGKey(0)
    k1, k2, k3, k4, k5, k6 = jax.random.split(key, 6)

    # Case 1: small NCHW image-like shape (lane-aligned element count -> no mask path).
    shape1 = (2, 4, 16, 16)
    a1 = jax.random.uniform(k1, shape1, jnp.float32, 0.0, 5.0)
    b1 = jax.random.uniform(k2, shape1, jnp.float32, 0.0, 5.0)
    out1 = jax.block_until_ready(poisson_mle(a1, b1))
    ref1 = jax.block_until_ready(poisson_mle_ref(a1, b1))
    assert jnp.allclose(out1, ref1, rtol=1e-5, atol=1e-4), (out1, ref1)

    # Case 2: element count NOT a multiple of 128 (exercises the in-kernel tail mask).
    shape2 = (2, 3, 15, 17)
    a2 = jax.random.uniform(k3, shape2, jnp.float32, 0.0, 5.0)
    b2 = jax.random.uniform(k4, shape2, jnp.float32, 0.0, 5.0)
    out2 = jax.block_until_ready(poisson_mle(a2, b2))
    ref2 = jax.block_until_ready(poisson_mle_ref(a2, b2))
    assert jnp.allclose(out2, ref2, rtol=1e-5, atol=1e-4), (out2, ref2)

    # Case 3: bfloat16 inputs (narrow-dtype streaming + in-kernel upcast).
    shape3 = (4, 4, 32, 32)
    a3 = jax.random.uniform(k5, shape3, jnp.float32, 0.0, 5.0).astype(jnp.bfloat16)
    b3 = jax.random.uniform(k6, shape3, jnp.float32, 0.0, 5.0).astype(jnp.bfloat16)
    out3 = jax.block_until_ready(poisson_mle(a3, b3))
    ref3 = jax.block_until_ready(poisson_mle_ref(a3, b3))
    assert jnp.allclose(out3, ref3, rtol=1e-4, atol=1e-2), (out3, ref3)

    print("KERNEL_OK")
</pallas_src>

<mosaic_0001>
module attributes {stable_mosaic.version = 11 : i64} {
  func.func @_poisson_mle_kernel(%arg0: i32, %arg1: i32, %arg2: memref<16x128xf32, #tpu.memory_space<vmem>>, %arg3: memref<16x128xf32, #tpu.memory_space<vmem>>, %arg4: memref<1x8x128xf32, #tpu.memory_space<vmem>>) attributes {dimension_semantics = [#tpu.dimension_semantics<parallel>, #tpu.dimension_semantics<arbitrary>], iteration_bounds = array<i64: 1, 1>, scalar_prefetch = 0 : i64, scratch_operands = 0 : i64, tpu.core_type = #tpu.core_type<tc>, window_params = [{transform_indices = @transform_0, window_bounds = array<i64: 16, 128>}, {transform_indices = @transform_1, window_bounds = array<i64: 16, 128>}, {transform_indices = @transform_2, window_bounds = array<i64: 1, 8, 128>}]} {
    %c0_i32 = arith.constant 0 : i32
    %0 = arith.cmpi eq, %arg1, %c0_i32 : i32
    %1 = arith.extui %0 : i1 to i32
    %c0_i32_0 = arith.constant 0 : i32
    %2 = arith.cmpi ne, %1, %c0_i32_0 : i32
    scf.if %2 {
      %cst_12 = arith.constant 0.000000e+00 : f32
      %20 = vector.broadcast %cst_12 : f32 to vector<1x8x128xf32>
      %c0_13 = arith.constant 0 : index
      %c0_14 = arith.constant 0 : index
      %c0_15 = arith.constant 0 : index
      %21 = vector.load %arg4[%c0_13, %c0_14, %c0_15] : memref<1x8x128xf32, #tpu.memory_space<vmem>>, vector<1x8x128xf32>
      tpu.vector_store %arg4[%c0_13, %c0_14, %c0_15], %20 {strides = array<i32>} : memref<1x8x128xf32, #tpu.memory_space<vmem>>, vector<1x8x128xf32>,
    } else {
    }
    %c0 = arith.constant 0 : index
    %c0_1 = arith.constant 0 : index
    %3 = vector.load %arg2[%c0, %c0_1] : memref<16x128xf32, #tpu.memory_space<vmem>>, vector<16x128xf32>
    %cst = arith.constant 9.99999997E-7 : f32
    %4 = vector.broadcast %cst : f32 to vector<16x128xf32>
    %5 = arith.maximumf %3, %4 : vector<16x128xf32>
    %c0_2 = arith.constant 0 : index
    %c0_3 = arith.constant 0 : index
    %6 = vector.load %arg3[%c0_2, %c0_3] : memref<16x128xf32, #tpu.memory_space<vmem>>, vector<16x128xf32>
    %cst_4 = arith.constant 9.99999997E-7 : f32
    %7 = vector.broadcast %cst_4 : f32 to vector<16x128xf32>
    %8 = arith.maximumf %6, %7 : vector<16x128xf32>
    %9 = arith.subf %5, %8 : vector<16x128xf32>
    %10 = arith.divf %5, %8 : vector<16x128xf32>
    %11 = math.log %10 : vector<16x128xf32>
    %12 = arith.mulf %8, %11 : vector<16x128xf32>
    %13 = arith.subf %9, %12 : vector<16x128xf32>
    %14 = vector.shape_cast %13 : vector<16x128xf32> to vector<2x8x128xf32>
    %cst_5 = arith.constant dense<0.000000e+00> : vector<8x128xf32>
    %15 = vector.multi_reduction <add>, %14, %cst_5 [0] : vector<2x8x128xf32> to vector<8x128xf32>
    %c0_6 = arith.constant 0 : index
    %c0_7 = arith.constant 0 : index
    %c0_8 = arith.constant 0 : index
    %16 = vector.load %arg4[%c0_6, %c0_7, %c0_8] : memref<1x8x128xf32, #tpu.memory_space<vmem>>, vector<1x8x128xf32>
    %17 = vector.shape_cast %15 : vector<8x128xf32> to vector<1x8x128xf32>
    %18 = arith.addf %16, %17 : vector<1x8x128xf32>
    %c0_9 = arith.constant 0 : index
    %c0_10 = arith.constant 0 : index
    %c0_11 = arith.constant 0 : index
    %19 = vector.load %arg4[%c0_9, %c0_10, %c0_11] : memref<1x8x128xf32, #tpu.memory_space<vmem>>, vector<1x8x128xf32>
    tpu.vector_store %arg4[%c0_9, %c0_10, %c0_11], %18 {strides = array<i32>} : memref<1x8x128xf32, #tpu.memory_space<vmem>>, vector<1x8x128xf32>,
    return
  }
  func.func @transform_0(%arg0: i32, %arg1: i32) -> (i32, i32) {
    %c1_i32 = arith.constant 1 : i32
    %0 = arith.muli %arg0, %c1_i32 : i32
    %1 = arith.addi %0, %arg1 : i32
    %c0_i32 = arith.constant 0 : i32
    %2 = arith.minsi %1, %c0_i32 : i32
    %c0_i32_0 = arith.constant 0 : i32
    %c0_i32_1 = arith.constant 0 : i32
    return %2, %c0_i32_0 : i32, i32
  }
  func.func @transform_1(%arg0: i32, %arg1: i32) -> (i32, i32) {
    %c1_i32 = arith.constant 1 : i32
    %0 = arith.muli %arg0, %c1_i32 : i32
    %1 = arith.addi %0, %arg1 : i32
    %c0_i32 = arith.constant 0 : i32
    %2 = arith.minsi %1, %c0_i32 : i32
    %c0_i32_0 = arith.constant 0 : i32
    %c0_i32_1 = arith.constant 0 : i32
    return %2, %c0_i32_0 : i32, i32
  }
  func.func @transform_2(%arg0: i32, %arg1: i32) -> (i32, i32, i32) {
    %c0_i32 = arith.constant 0 : i32
    %c0_i32_0 = arith.constant 0 : i32
    %c0_i32_1 = arith.constant 0 : i32
    return %arg0, %c0_i32, %c0_i32_0 : i32, i32, i32
  }
}

</mosaic_0001>

<bundles_post_ra>
// kernel: tpu_custom_call.1
= control target key start
LH: loop header
LB: loop body
LE: loop exit
PB: predicated region body
PF: predicated region fallthrough
CT: control target
= control target key end

     0   :  { %7 = vsyncpa [#allocation3], 0  ;;  %s253_s0 = inlined_call_operand.hbm [shape: f32[16,128], index: 0, kind: input, shape index: {}]   ;;  %s254_s1 = inlined_call_operand.hbm [shape: f32[16,128], index: 1, kind: input, shape index: {}]   ;;  %s255_s2 = inlined_call_operand.hbm [shape: f32[1,8,128], index: 2, kind: output, shape index: {}]  }
   0x1   :  { %8 = vsyncpa [#allocation6], 0 }
   0x2   :  { %9 = vsyncpa [#allocation4], 0  ;;  %s197_s9 = smov [#allocation2]   ;;  %s125_s13 = scalar_lea.hbm %s253_s0, 256 }
   0x3   :  { %s21_s10 = sshll.u32 %s197_s9, 4  ;;  %p126_p0 = scmp.ne.s32.totalorder %s253_s0, %s125_s13  ;;  %s22_s10 = int_to_ptr.vmem [resolvable:$true] %s21_s10 }
   0x4   :  { %p129_p1 = scmp.lt.u32.totalorder %s125_s13, %s253_s0 }
   0x6   :  { %p131_p2 = pnand %p129_p1, %p126_p0 }
   0x8   :  { %134 = shalt.err (!%p131_p2)
}
   0x9   :  { %s135_s18 = scalar_lea.vmem %s22_s10, 256  ;;  %p140_p4 = scmp.lt.s32.totalorder %s22_s10, %s22_s10 }
   0xa   :  { %p136_p3 = scmp.ne.s32.totalorder %s22_s10, %s135_s18  ;;  %p141_p5 = scmp.lt.s32.totalorder %s135_s18, %s135_s18 }
   0xc   :  { %p142_p6 = por %p141_p5, %p140_p4 }
   0xe   :  { %p143_p7 = pnand %p142_p6, %p136_p3 }
  0x10   :  { %146 = shalt.err (!%p143_p7)
}
  0x11   :  { %s198_s19 = smov 128   ;;  %s199_s20 = smov 8  }
  0x12   :  { %27 = dma.hbm_to_vmem [thread:$0]  %s253_s0, 256, %s22_s10, [#allocation3], %s198_s19, %s198_s19, %s199_s20  }
  0x13   :  { %s200_s23 = smov [#allocation5]   ;;  %s147_s27 = scalar_lea.hbm %s254_s1, 256 }
  0x14   :  { %s39_s24 = sshll.u32 %s200_s23, 4  ;;  %p148_p8 = scmp.ne.s32.totalorder %s254_s1, %s147_s27  ;;  %s40_s24 = int_to_ptr.vmem [resolvable:$true] %s39_s24 }
  0x15   :  { %p151_p9 = scmp.lt.u32.totalorder %s147_s27, %s254_s1 }
  0x17   :  { %p153_p10 = pnand %p151_p9, %p148_p8 }
  0x19   :  { %156 = shalt.err (!%p153_p10)
}
  0x1a   :  { %s157_s4 = scalar_lea.vmem %s40_s24, 256  ;;  %p162_p12 = scmp.lt.s32.totalorder %s40_s24, %s40_s24 }
  0x1b   :  { %p158_p11 = scmp.ne.s32.totalorder %s40_s24, %s157_s4  ;;  %p163_p13 = scmp.lt.s32.totalorder %s157_s4, %s157_s4 }
  0x1d   :  { %p164_p0 = por %p163_p13, %p162_p12 }
  0x1f   :  { %p165_p1 = pnand %p164_p0, %p158_p11 }
  0x21   :  { %168 = shalt.err (!%p165_p1)
}
  0x22   :  { %45 = dma.hbm_to_vmem [thread:$0]  %s254_s1, 256, %s40_s24, [#allocation6], %s198_s19, %s198_s19, %s199_s20  }
  0x23   :  { %191 = dma.done.wait [#allocation3], 256  }
  0x24   :  { %192 = vsyncadd [#allocation3], 4294967040 }
  0x25   :  { %193 = dma.done.wait [#allocation6], 256  }
  0x26   :  { %194 = vsyncadd [#allocation6], 4294967040  ;;  %v69_v0 = vld [vmem:[#allocation5] sm:$0xff]  ;;  %v70_v1 = vld [vmem:[#allocation5 + $0x8] sm:$0xff]  ;;  %s201_s1 = smov [#allocation7]  }
  0x27   :  { %v71_v2 = vmax.f32 %v69_v0, 1e-06  ;;  %v72_v3 = vmax.f32 %v70_v1, 1e-06  ;;  %v65_v4 = vld [vmem:[#allocation2] sm:$0xff]  ;;  %v66_v5 = vld [vmem:[#allocation2 + $0x8] sm:$0xff] }
  0x28   :  { %v67_v6 = vmax.f32 %v65_v4, 1e-06  ;;  %v68_v7 = vmax.f32 %v66_v5, 1e-06  ;;  %s97_s6 = sshll.u32 %s201_s1, 4  ;;  %s98_s6 = int_to_ptr.vmem [resolvable:$true] %s97_s6 }
  0x29   :  { %117 = vrcp.f32 %v71_v2  ;;  %s169_s7 = scalar_lea.vmem %s98_s6, 128  ;;  %p174_p3 = scmp.lt.s32.totalorder %s98_s6, %s98_s6 }
  0x2a   :  { %119 = vrcp.f32 %v72_v3  ;;  %v73_v14 = vsub.f32 %v67_v6, %v71_v2  ;;  %v74_v16 = vsub.f32 %v68_v7, %v72_v3  ;;  %p170_p2 = scmp.ne.s32.totalorder %s98_s6, %s169_s7  ;;  %p175_p4 = scmp.lt.s32.totalorder %s169_s7, %s169_s7 }
  0x2c   :  { %p176_p5 = por %p175_p4, %p174_p3 }
  0x2e   :  { %p177_p6 = pnand %p176_p5, %p170_p2 }
  0x33   :  { %v118_v8 = vpop.eup %117 }
  0x34   :  { %v120_v9 = vpop.eup %119  ;;  %v76_v10 = vmul.f32 %v118_v8, %v67_v6 }
  0x35   :  { %v78_v11 = vmul.f32 %v120_v9, %v68_v7 }
  0x36   :  { %121 = vlog2.f32 %v76_v10 }
  0x37   :  { %123 = vlog2.f32 %v78_v11 }
  0x40   :  { %v122_v12 = vpop.eup %121 }
  0x41   :  { %v124_v13 = vpop.eup %123  ;;  %v80_v15 = vmul.f32 0.6931472, %v122_v12 }
  0x42   :  { %v82_v17 = vmul.f32 0.6931472, %v124_v13 }
  0x43   :  { %v83_v18 = vmul.f32 %v80_v15, %v71_v2 }
  0x44   :  { %v84_v19 = vmul.f32 %v82_v17, %v72_v3 }
  0x45   :  { %v85_v20 = vsub.f32 %v73_v14, %v83_v18 }
  0x46   :  { %v86_v21 = vsub.f32 %v74_v16, %v84_v19 }
  0x48   :  { %v87_v22 = vadd.f32 %v86_v21, %v85_v20 }
  0x4a   :  { %90 = vst [vmem:[#allocation7] sm:$0xff] %v87_v22 }
  0x4b   :  { %180 = shalt.err (!%p177_p6)
}
  0x4c   :  { %s181_s10 = scalar_lea.hbm %s255_s2, 128 }
  0x4d   :  { %p182_p7 = scmp.ne.s32.totalorder %s255_s2, %s181_s10  ;;  %p185_p8 = scmp.lt.u32.totalorder %s181_s10, %s255_s2 }
  0x4f   :  { %p187_p9 = pnand %p185_p8, %p182_p7 }
  0x51   :  { %190 = shalt.err (!%p187_p9)
}
  0x52   :  { %100 = dma.vmem_to_hbm [thread:$0]  %s98_s6, 128, %s255_s2, [#allocation4]  }
  0x53   :  { %195 = dma.done.wait [#allocation4], 128  }
  0x54   :  { %196 = vsyncadd [#allocation4], 4294967168 }
  0x55   :  { %104 = vsyncpa [#allocation3], 1 }
  0x56   :  { %105 = vsyncpa [#allocation6], 1 }
  0x57   :  { %106 = vsyncpa [#allocation4], 1 }

</bundles_post_ra>
